<compile_context>
chip_gen: v5e
topology: v5e:2x2
jax: 0.10.0
libtpu: 0.0.40
codegen_flags: <defaults>
</compile_context>

<pallas_src>
import math

import numpy as np

import jax
import jax.numpy as jnp
from jax.experimental import pallas as pl
from jax.experimental.pallas import tpu as pltpu

_LANE = 128
_MAX_BATCH_TILE = 8192          # rows; <2 MiB double-buffered VMEM at these widths
_MIN_BATCH_TILE = 512           # below this a single tile is fine
_SMALL_BATCH_FALLBACK = 512     # below this, skip pallas_call entirely


def _round_up(n, m):
    return ((n + m - 1) // m) * m


def _select_batch_tile(B, max_tile):
    """Pick a batch tile. Aim for >= 2 grid tiles (v7x megacore) when B is large."""
    if B <= _MIN_BATCH_TILE:
        return B                                   # single full-extent tile
    half = _round_up(-(-B // 2), 16)               # >=2 tiles; 16-row align (bf16 sublanes)
    return min(max_tile, max(_MIN_BATCH_TILE, half))


def _mean_kernel(mode, num_outputs):
    """mode in {"tanh", "sigmoid", "none"} -- resolved statically at trace time."""

    def kernel(x_ref, w_ref, c_ref, mean_ref):
        # action_mean = x @ W_pad + b  (MXU, f32 accumulation; inputs may be bf16)
        acc = jnp.dot(x_ref[...], w_ref[...], preferred_element_type=jnp.float32)
        acc = acc + c_ref[0:1, :]                    # bias row (f32), lane broadcast
        if mode == "tanh":
            acc = jnp.tanh(acc)                      # f32 transcendental (v5e-safe)
        elif mode == "sigmoid":
            acc = jax.nn.sigmoid(acc) * c_ref[2:3, :] + c_ref[1:2, :]
        # Narrow store: only the num_outputs valid lanes go back to HBM.
        mean_ref[...] = acc[:, :num_outputs].astype(mean_ref.dtype)

    return kernel


def prepare_diag_gaussian_params(weight, bias, logstd, *, min_std,
                                 norm_actions_of_policy, action_low, action_high,
                                 input_dtype=jnp.bfloat16):
    """One-time (init-time) parameter prep for the Pallas forward.

    * Transposes + lane-pads the nn.Linear weight (cast to `input_dtype`) so the
      kernel does a plain lane-dense x @ W matmul on the MXU.
    * Packs bias / action_low / (high - low) into one (8, n_pad) f32 constant.
    * Resolves the tanh vs sigmoid squashing branch on the host with NumPy.
    * Precomputes std = max(min_std, exp(logstd)) (independent of x).
    """
    weight = jnp.asarray(weight, jnp.float32)
    bias = jnp.asarray(bias, jnp.float32)
    logstd = jnp.asarray(logstd, jnp.float32)
    num_outputs, num_inputs = weight.shape
    n_pad = _round_up(num_outputs, _LANE)

    w_t_pad = (jnp.zeros((num_inputs, n_pad), jnp.float32)
               .at[:, :num_outputs].set(weight.T)).astype(input_dtype)
    w_t = weight.T.astype(input_dtype)               # narrow copy for the jnp fallback

    # Branch resolution with plain NumPy: no device work / host sync per forward.
    low_np = np.asarray(action_low, dtype=np.float32).reshape(-1)
    high_np = np.asarray(action_high, dtype=np.float32).reshape(-1)
    unique_limits = (np.unique(low_np).size == 1) and (np.unique(high_np).size == 1)
    if not norm_actions_of_policy:
        mode = "none"
    elif unique_limits and low_np[0] == -1.0 and high_np[0] == 1.0:
        mode = "tanh"
    else:
        mode = "sigmoid"

    # Packed constants: row 0 = bias, row 1 = action_low, row 2 = (high - low).
    consts = jnp.zeros((8, n_pad), jnp.float32)
    consts = consts.at[0, :num_outputs].set(bias)
    consts = consts.at[1, :num_outputs].set(jnp.asarray(low_np))
    consts = consts.at[2, :num_outputs].set(jnp.asarray(high_np - low_np))

    # std does not depend on x -> compute once here, not inside the kernel grid.
    std = jnp.maximum(jnp.float32(min_std), jnp.exp(logstd))

    return dict(
        w_t_pad=w_t_pad, w_t=w_t, consts=consts, std=std,
        num_outputs=num_outputs, num_inputs=num_inputs, n_pad=n_pad,
        mode=mode, input_dtype=input_dtype,
    )


def _forward_jnp(x, params):
    """Small-batch fallback: fused XLA dot + squash (same precision as the kernel)."""
    n = params["num_outputs"]
    c = params["consts"]
    acc = jnp.dot(x.astype(params["input_dtype"]), params["w_t"],
                  preferred_element_type=jnp.float32)
    acc = acc + c[0, :n]
    mode = params["mode"]
    if mode == "tanh":
        acc = jnp.tanh(acc)
    elif mode == "sigmoid":
        acc = jax.nn.sigmoid(acc) * c[2, :n] + c[1, :n]
    return acc


def diag_gaussian_forward(x, params, *, batch_tile=_MAX_BATCH_TILE, force_pallas=False):
    """Pallas implementation of DiagGaussian.forward(x, return_dist_params=True).

    Default path only (weight=None, bias=None, scaling=None).
    Returns (action_mean [B, num_outputs] float32, std [num_outputs] float32).
    """
    x = jnp.asarray(x)
    B, num_inputs = x.shape
    assert num_inputs == params["num_inputs"], (num_inputs, params["num_inputs"])
    n_pad = params["n_pad"]
    num_outputs = params["num_outputs"]

    if (not force_pallas) and B < _SMALL_BATCH_FALLBACK:
        # Tiny-batch RL-policy case: a single fused XLA dot beats kernel launch cost.
        return _forward_jnp(x, params), params["std"]

    # Halve the x HBM stream on the mem-bound roofline (cast fuses with the
    # producer when the whole policy is jitted; ideally x already arrives bf16).
    if x.dtype != params["input_dtype"]:
        x = x.astype(params["input_dtype"])

    tb = _select_batch_tile(B, batch_tile)
    grid = (pl.cdiv(B, tb),)

    kernel = _mean_kernel(params["mode"], num_outputs)

    action_mean = pl.pallas_call(
        kernel,
        out_shape=jax.ShapeDtypeStruct((B, num_outputs), jnp.float32),
        grid_spec=pltpu.PrefetchScalarGridSpec(
            num_scalar_prefetch=0,
            grid=grid,
            in_specs=[
                pl.BlockSpec((tb, num_inputs), lambda i: (i, 0)),      # x tile
                pl.BlockSpec((num_inputs, n_pad), lambda i: (0, 0)),   # W^T (padded, bf16)
                pl.BlockSpec((8, n_pad), lambda i: (0, 0)),            # packed constants
            ],
            out_specs=pl.BlockSpec((tb, num_outputs), lambda i: (i, 0)),  # narrow mean
        ),
        compiler_params=pltpu.CompilerParams(
            dimension_semantics=("parallel",),   # shard batch tiles across TCs (v7x)
            vmem_limit_bytes=32 * 1024 * 1024,   # far above the ~2 MiB actually needed
        ),
    )(x, params["w_t_pad"], params["consts"])

    return action_mean, params["std"]


def init_normc(key, num_outputs, num_inputs, gain):
    """Deterministic equivalent of init_normc_: N(0,1), row-normalized * gain."""
    w = jax.random.normal(key, (num_outputs, num_inputs), dtype=jnp.float32)
    w = w * gain / jnp.sqrt(jnp.sum(w * w, axis=1, keepdims=True))
    return w


if __name__ == "__main__":
    # Small config consistent with the module's __init__.
    batch = 8
    num_inputs = 32
    num_outputs = 8
    init_std = 1.0
    min_std = 1e-6
    gain = 1.0

    key = jax.random.PRNGKey(0)
    k_x, k_w, k_xl = jax.random.split(key, 3)

    x = jax.random.normal(k_x, (batch, num_inputs), dtype=jnp.float32)

    # Deterministic parameter init (mirrors init(nn.Linear, init_normc_, const 0, gain)).
    weight = init_normc(k_w, num_outputs, num_inputs, gain)        # fc_mean.weight
    bias = jnp.zeros((num_outputs,), dtype=jnp.float32)            # fc_mean.bias
    logstd = jnp.full((num_outputs,), math.log(init_std), dtype=jnp.float32)

    ref_std = jnp.maximum(jnp.float32(min_std), jnp.exp(logstd))

    # --- tanh branch, bf16 MXU inputs (default), forced through the Pallas kernel ---
    action_low = np.full((num_outputs,), -1.0, dtype=np.float32)
    action_high = np.full((num_outputs,), 1.0, dtype=np.float32)
    params_bf16 = prepare_diag_gaussian_params(
        weight, bias, logstd, min_std=min_std, norm_actions_of_policy=True,
        action_low=action_low, action_high=action_high)
    mean, std = diag_gaussian_forward(x, params_bf16, force_pallas=True)
    jax.block_until_ready(mean)
    jax.block_until_ready(std)
    ref_mean = jnp.tanh(x @ weight.T + bias)
    assert mean.shape == (batch, num_outputs)
    assert std.shape == (num_outputs,)
    np.testing.assert_allclose(np.asarray(mean), np.asarray(ref_mean),
                               rtol=3e-2, atol=3e-2)        # bf16-input precision
    np.testing.assert_allclose(np.asarray(std), np.asarray(ref_std),
                               rtol=1e-6, atol=1e-6)

    # --- sigmoid branch, f32 inputs, forced through the Pallas kernel (exact path) ---
    action_low2 = np.full((num_outputs,), 0.0, dtype=np.float32)
    action_high2 = np.full((num_outputs,), 2.0, dtype=np.float32)
    params_f32 = prepare_diag_gaussian_params(
        weight, bias, logstd, min_std=min_std, norm_actions_of_policy=True,
        action_low=action_low2, action_high=action_high2, input_dtype=jnp.float32)
    mean2, _ = diag_gaussian_forward(x, params_f32, force_pallas=True)
    jax.block_until_ready(mean2)
    ref_mean2 = (jax.nn.sigmoid(x @ weight.T + bias)
                 * jnp.asarray(action_high2 - action_low2) + jnp.asarray(action_low2))
    np.testing.assert_allclose(np.asarray(mean2), np.asarray(ref_mean2),
                               rtol=1e-5, atol=1e-5)

    # --- multi-tile grid (B=1024 -> tb=512, grid=(2,), batch axis 'parallel') ---
    xl = jax.random.normal(k_xl, (1024, num_inputs), dtype=jnp.float32)
    mean3, _ = diag_gaussian_forward(xl, params_bf16)
    jax.block_until_ready(mean3)
    ref_mean3 = jnp.tanh(xl @ weight.T + bias)
    np.testing.assert_allclose(np.asarray(mean3), np.asarray(ref_mean3),
                               rtol=3e-2, atol=3e-2)

    # --- small-batch jnp fallback path (B=8 < 512, no pallas_call) ---
    mean4, _ = diag_gaussian_forward(x, params_bf16)
    jax.block_until_ready(mean4)
    np.testing.assert_allclose(np.asarray(mean4), np.asarray(ref_mean),
                               rtol=3e-2, atol=3e-2)

    print("KERNEL_OK")
</pallas_src>

<mosaic_0001>
module attributes {stable_mosaic.version = 11 : i64} {
  func.func @kernel(%arg0: i32, %arg1: memref<8x32xbf16, #tpu.memory_space<vmem>>, %arg2: memref<32x128xbf16, #tpu.memory_space<vmem>>, %arg3: memref<8x128xf32, #tpu.memory_space<vmem>>, %arg4: memref<8x8xf32, #tpu.memory_space<vmem>>) attributes {dimension_semantics = [#tpu.dimension_semantics<parallel>], iteration_bounds = array<i64: 1>, scalar_prefetch = 0 : i64, scratch_operands = 0 : i64, tpu.core_type = #tpu.core_type<tc>, window_params = [{transform_indices = @transform_0, window_bounds = array<i64: 8, 32>}, {pipeline_mode = #tpu.pipeline_mode<synchronous>, transform_indices = @transform_1, window_bounds = array<i64: 32, 128>}, {pipeline_mode = #tpu.pipeline_mode<synchronous>, transform_indices = @transform_2, window_bounds = array<i64: 8, 128>}, {transform_indices = @transform_3, window_bounds = array<i64: 8, 8>}]} {
    %c0 = arith.constant 0 : index
    %c0_0 = arith.constant 0 : index
    %0 = vector.load %arg1[%c0, %c0_0] : memref<8x32xbf16, #tpu.memory_space<vmem>>, vector<8x32xbf16>
    %c0_1 = arith.constant 0 : index
    %c0_2 = arith.constant 0 : index
    %1 = vector.load %arg2[%c0_1, %c0_2] : memref<32x128xbf16, #tpu.memory_space<vmem>>, vector<32x128xbf16>
    %cst = arith.constant dense<0.000000e+00> : vector<8x128xf32>
    %2 = tpu.matmul %0, %1, %cst {dimension_numbers = #tpu.dot_dimension_numbers<[1], [0], [0], [1], [0, 0, 1, 1], [], []>} : vector<8x32xbf16>, vector<32x128xbf16>, vector<8x128xf32> -> vector<8x128xf32>
    %c0_3 = arith.constant 0 : index
    %c0_4 = arith.constant 0 : index
    %3 = vector.load %arg3[%c0_3, %c0_4] : memref<8x128xf32, #tpu.memory_space<vmem>>, vector<1x128xf32>
    %4 = vector.broadcast %3 : vector<1x128xf32> to vector<8x128xf32>
    %5 = arith.addf %2, %4 : vector<8x128xf32>
    %6 = math.tanh %5 : vector<8x128xf32>
    %7 = vector.extract_strided_slice %6 {offsets = [0, 0], sizes = [8, 8], strides = [1, 1]} : vector<8x128xf32> to vector<8x8xf32>
    %c0_5 = arith.constant 0 : index
    %c0_6 = arith.constant 0 : index
    %8 = vector.load %arg4[%c0_5, %c0_6] : memref<8x8xf32, #tpu.memory_space<vmem>>, vector<8x8xf32>
    tpu.vector_store %arg4[%c0_5, %c0_6], %7 {strides = array<i32>} : memref<8x8xf32, #tpu.memory_space<vmem>>, vector<8x8xf32>,
    return
  }
  func.func @transform_0(%arg0: i32) -> (i32, i32) {
    %c0_i32 = arith.constant 0 : i32
    %c0_i32_0 = arith.constant 0 : i32
    return %arg0, %c0_i32 : i32, i32
  }
  func.func @transform_1(%arg0: i32) -> (i32, i32) {
    %c0_i32 = arith.constant 0 : i32
    %c0_i32_0 = arith.constant 0 : i32
    %c0_i32_1 = arith.constant 0 : i32
    return %c0_i32, %c0_i32_0 : i32, i32
  }
  func.func @transform_2(%arg0: i32) -> (i32, i32) {
    %c0_i32 = arith.constant 0 : i32
    %c0_i32_0 = arith.constant 0 : i32
    %c0_i32_1 = arith.constant 0 : i32
    return %c0_i32, %c0_i32_0 : i32, i32
  }
  func.func @transform_3(%arg0: i32) -> (i32, i32) {
    %c0_i32 = arith.constant 0 : i32
    %c0_i32_0 = arith.constant 0 : i32
    return %arg0, %c0_i32 : i32, i32
  }
}

</mosaic_0001>

<bundles_post_ra>
// kernel: tpu_custom_call.1
= control target key start
LH: loop header
LB: loop body
LE: loop exit
PB: predicated region body
PF: predicated region fallthrough
CT: control target
= control target key end

     0   :  { %8 = vsyncpa [#allocation3], 0  ;;  %s276_s0 = inlined_call_operand.hbm [shape: bf16[8,32], index: 0, kind: input, shape index: {}]   ;;  %s277_s1 = inlined_call_operand.hbm [shape: bf16[32,128], index: 1, kind: input, shape index: {}]   ;;  %s278_s2 = inlined_call_operand.hbm [shape: f32[8,128], index: 2, kind: input, shape index: {}]   ;;  %s279_s3 = inlined_call_operand.hbm [shape: f32[8,8], index: 3, kind: output, shape index: {}]  }
   0x1   :  { %9 = vsyncpa [#allocation6], 0  ;;  %s26_s14 = sshll.u32 %s277_s1, 4  ;;  %s27_s14 = int_to_ptr.hbm [resolvable:$true] %s26_s14 }
   0x2   :  { %10 = vsyncpa [#allocation4], 0  ;;  %s238_s15 = smov [#allocation5]   ;;  %s16_s19 = sshll.u32 %s276_s0, 4  ;;  %s17_s19 = int_to_ptr.hbm [resolvable:$true] %s16_s19 }
   0x3   :  { %s28_s16 = sshll.u32 %s238_s15, 4  ;;  %s239_s20 = smov 64   ;;  %s29_s16 = int_to_ptr.vmem [resolvable:$true] %s28_s16 }
   0x4   :  { %s240_s21 = smov 4   ;;  %s241_s22 = smov [#allocation2]  }
   0x5   :  { %34 = dma.hbm_to_vmem [thread:$0]  %s27_s14, 256, %s29_s16, [#allocation6], %s239_s20, %s239_s20, %s240_s21  }
   0x6   :  { %s18_s23 = sshll.u32 %s241_s22, 4  ;;  %s40_s26 = sshll.u32 %s278_s2, 4  ;;  %s19_s23 = int_to_ptr.vmem [resolvable:$true] %s18_s23  ;;  %s41_s26 = int_to_ptr.hbm [resolvable:$true] %s40_s26 }
   0x7   :  { %21 = dma.hbm_to_vmem [thread:$0]  %s17_s19, 64, %s19_s23, [#allocation3]  }
   0x8   :  { %s242_s1 = smov [#allocation7]  }
   0x9   :  { %s42_s27 = sshll.u32 %s242_s1, 4  ;;  %s43_s27 = int_to_ptr.vmem [resolvable:$true] %s42_s27 }
   0xa   :  { %45 = dma.hbm_to_vmem [thread:$0]  %s41_s26, 128, %s43_s27, [#allocation6]  }
   0xb   :  { %232 = dma.done.wait [#allocation3], 64  }
   0xc   :  { %233 = vsyncadd [#allocation3], 4294967232 }
   0xd   :  { %234 = dma.done.wait [#allocation6], 384  }
   0xe   :  { %235 = vsyncadd [#allocation6], 4294966912  ;;  %v126_v0 = vld [vmem:[#allocation5 + $0x8] sm:$0xff]  ;;  %v125_v1 = vld [vmem:[#allocation5] sm:$0xff]  ;;  %vm78_vm0 = vcmask 261120   ;;  %s243_s0 = smov [#allocation8]  }
   0xf   :  { %88 = vmatpush.bf16.msra.mxu0 %v126_v0  ;;  %v59_v2 = vld [vmem:[#allocation2] sm:$0xf]  ;;  %v133_v3 = vld [vmem:[#allocation7] ss:$0 sm:$0xff]  ;;  %s103_s2 = sshll.u32 %s243_s0, 4  ;;  %s105_s30 = sshll.u32 %s279_s3, 4  ;;  %s104_s2 = int_to_ptr.vmem [resolvable:$true] %s103_s2  ;;  %s106_s30 = int_to_ptr.hbm [resolvable:$true] %s105_s30 }
  0x10   :  { %vm96_vm1 = vcmask 64512  }
  0x13   :  { %89 = vmatpush.bf16.msra.mxu0 %v125_v1 }
  0x16   :  { %124 = vmatmul.msk.bf16.vlgmr.msra.gmra.mxu0 %vm78_vm0, %v59_v2 }
  0x93   :  { %v91_v4 = vpop.f32.mrf.mxu0 }
  0x94   :  { %v92_v5 = vadd.f32 %v133_v3, %v91_v4 }
  0x96   :  { %134 = vtanh.f32 %v92_v5 }
  0x9b   :  { %v93_v6 = vpop.f32.mrf.mxu0 }
  0x9c   :  { %v135_v7 = vpop.eup %134 }
  0x9d   :  { %97 = vst.msk [vmem:[#allocation8] sm:$0xff] %vm96_vm1, %v135_v7 }
  0x9e   :  { %108 = dma.vmem_to_hbm [thread:$0]  %s104_s2, 128, %s106_s30, [#allocation4]  }
  0x9f   :  { %236 = dma.done.wait [#allocation4], 128  }
  0xa0   :  { %237 = vsyncadd [#allocation4], 4294967168 }
  0xa1   :  { %113 = vsyncpa [#allocation3], 1 }
  0xa2   :  { %114 = vsyncpa [#allocation6], 1 }
  0xa3   :  { %115 = vsyncpa [#allocation4], 1 }

</bundles_post_ra>
